<compile_context>
chip_gen: v7x
topology: tpu7x:2x2x1
jax: 0.10.0
libtpu: 0.0.40
codegen_flags: <defaults>
</compile_context>

<pallas_src>
import jax
import jax.numpy as jnp
from jax.experimental import pallas as pl
from jax.experimental.pallas import tpu as pltpu


def _constant_speaker_kernel(spk_ref, out_ref):
    # Pure materialization: copy the whole (1, speaker_dim) parameter tile.
    out_ref[...] = spk_ref[...]


def _constant_speaker_forward_impl(spk_param: jax.Array) -> jax.Array:
    """Forward pass of ConstantSpeaker.

    Args:
      spk_param: parameter of shape (1, speaker_dim, 1) (PyTorch layout).

    Returns:
      Array of shape (1, speaker_dim, 1), identical to the parameter.
    """
    speaker_dim = spk_param.shape[1]

    # Lane-dense (1, speaker_dim) presentation; reshape is a bitcast under jit.
    spk_2d = spk_param.reshape(1, speaker_dim)

    out_2d = pl.pallas_call(
        _constant_speaker_kernel,
        out_shape=jax.ShapeDtypeStruct((1, speaker_dim), spk_2d.dtype),
        # Gridless, whole-array blocks: no grid loop, no index_maps,
        # no double-buffering bookkeeping.
        in_specs=[pl.BlockSpec(memory_space=pltpu.MemorySpace.VMEM)],
        out_specs=pl.BlockSpec(memory_space=pltpu.MemorySpace.VMEM),
        # Let the output alias the parameter buffer (identity op).
        input_output_aliases={0: 0},
    )(spk_2d)

    # Back to the PyTorch (1, speaker_dim, 1) layout (bitcast under jit).
    return out_2d.reshape(1, speaker_dim, 1)


# Jit the whole forward so the layout reshapes around the custom call fuse
# into the same XLA program instead of materializing as standalone ops.
constant_speaker_forward = jax.jit(_constant_speaker_forward_impl)


class ConstantSpeaker:
    """JAX mirror of the PyTorch ConstantSpeaker module."""

    def __init__(self, speaker_dim: int = 256):
        # nn.Parameter(torch.zeros(1, speaker_dim, 1)) -> deterministic zeros init.
        self.spk = jnp.zeros((1, speaker_dim, 1), dtype=jnp.float32)

    def __call__(self) -> jax.Array:
        return constant_speaker_forward(self.spk)


if __name__ == "__main__":
    key = jax.random.PRNGKey(0)
    speaker_dim = 256

    # 1) Faithful module (zeros parameter, as in __init__).
    module = ConstantSpeaker(speaker_dim=speaker_dim)
    out_zero = jax.block_until_ready(module())
    assert out_zero.shape == (1, speaker_dim, 1)
    assert out_zero.dtype == jnp.float32
    assert bool(jnp.all(out_zero == 0.0))

    # 2) Kernel correctness with non-zero parameter values.
    spk_rand = jax.random.normal(key, (1, speaker_dim, 1), dtype=jnp.float32)
    out_rand = jax.block_until_ready(constant_speaker_forward(spk_rand))
    assert out_rand.shape == (1, speaker_dim, 1)
    assert bool(jnp.allclose(out_rand, spk_rand))
    # Parameter must not be clobbered despite the output aliasing hint.
    assert bool(jnp.allclose(spk_rand, jax.block_until_ready(spk_rand)))

    print("KERNEL_OK")
</pallas_src>

<mosaic_0001>
module attributes {stable_mosaic.version = 11 : i64} {
  func.func @_constant_speaker_kernel(%arg0: memref<1x256xf32, #tpu.memory_space<vmem>>, %arg1: memref<1x256xf32, #tpu.memory_space<vmem>>) attributes {dimension_semantics = [], scalar_prefetch = 0 : i64, scratch_operands = 0 : i64, tpu.core_type = #tpu.core_type<tc>} {
    %c0 = arith.constant 0 : index
    %c0_0 = arith.constant 0 : index
    %0 = vector.load %arg0[%c0, %c0_0] : memref<1x256xf32, #tpu.memory_space<vmem>>, vector<1x256xf32>
    %c0_1 = arith.constant 0 : index
    %c0_2 = arith.constant 0 : index
    %1 = vector.load %arg1[%c0_1, %c0_2] : memref<1x256xf32, #tpu.memory_space<vmem>>, vector<1x256xf32>
    tpu.vector_store %arg1[%c0_1, %c0_2], %0 {strides = array<i32>} : memref<1x256xf32, #tpu.memory_space<vmem>>, vector<1x256xf32>,
    return
  }
}

</mosaic_0001>

<bundles_post_ra>
// kernel: _constant_speaker_forward_impl.1
= control target key start
LH: loop header
LB: loop body
LE: loop exit
PB: predicated region body
PF: predicated region fallthrough
CT: control target
= control target key end

     0   :  { %v9_v0 = vlaneseq  ;;  %s34_s0 = inlined_call_operand.vmem [shape: f32[1,256], index: 0, kind: input, shape index: {}, may-alias: {0,1}]   ;;  %s35_s1 = inlined_call_operand.vmem [shape: f32[1,256], index: 1, kind: output, shape index: {}, may-alias: {0,1}]  }
   0x1   :  { %v8_v1 = vld [vmem:[%s34_s0] sm:$0x3] }
   0x2   :  { %vm11_vm0 = vcmp.lt.s32.totalorder %v9_v0, 256 }
   0x3   :  { %13 = vst.msk [vmem:[%s35_s1] sm:$0x3] %vm11_vm0, %v8_v1 }

</bundles_post_ra>
